<compile_context>
chip_gen: v7x
topology: tpu7x:2x2x1
jax: 0.10.0
libtpu: 0.0.40
codegen_flags: <defaults>
</compile_context>

<pallas_src>
import jax
import jax.numpy as jnp
from jax.experimental import pallas as pl
from jax.experimental.pallas import tpu as pltpu


def _reg_head_kernel(x_ref, m_ref, w1_ref, b1_ref, w2_ref, b2_ref,
                     w3_ref, b3_ref, o_ref):
    """One FPN level per grid step.

    x_ref : (1, Cin, W)  bf16  packed input, W = B * (Tmax + 2*pad)
    m_ref : (1, 2, W)    f32   row 0: {0,1} mask, row 1: mask * level_scale
    w1_ref: (F, K*Cin)   bf16  b1_ref: (F, 1) f32
    w2_ref: (F, K*F)     bf16  b2_ref: (F, 1) f32
    w3_ref: (K*F, 1)     f32   b3_ref: (1, 1) f32
    o_ref : (1, 1, W)    f32
    """
    cin = x_ref.shape[1]
    K = w1_ref.shape[1] // cin
    pad = K // 2
    W = x_ref.shape[2]

    x = x_ref[0]                     # (Cin, W) bf16
    m = m_ref[0]                     # (2, W)   f32
    m01 = m[0:1, :]                  # (1, W)   {0,1} mask
    mfin = m[1:2, :]                 # (1, W)   mask * per-level Scale()

    def taps(a):
        # (R, W) -> (K*R, W); row-block k, column t holds a[:, t - pad + k]
        # (zero outside).  Lane shifts + sublane concat, no VMEM scratch,
        # no per-tap matmul.
        z = jnp.zeros((a.shape[0], pad), a.dtype)
        ap = jnp.concatenate([z, a, z], axis=1)              # (R, W + 2*pad)
        return jnp.concatenate([ap[:, k:k + W] for k in range(K)], axis=0)

    # conv1 (MaskedConv1D) + Identity norm + ReLU -- one fused-tap matmul
    h = jnp.dot(w1_ref[...], taps(x), preferred_element_type=jnp.float32)
    h = jnp.maximum((h + b1_ref[...]) * m01, 0.0)            # (F, W) f32

    # conv2 + Identity norm + ReLU
    h = jnp.dot(w2_ref[...], taps(h.astype(w2_ref.dtype)),
                preferred_element_type=jnp.float32)
    h = jnp.maximum((h + b2_ref[...]) * m01, 0.0)            # (F, W) f32

    # offset head (1 out channel): VPU multiply + sublane reduce, no MXU
    o = jnp.sum(taps(h) * w3_ref[...], axis=0, keepdims=True)   # (1, W)

    # mask, per-level Scale (folded into mfin) and final ReLU; lane-dense store
    o_ref[0] = jnp.maximum((o + b3_ref[...]) * mfin, 0.0)


def pt_transformer_reg_head(fpn_feats, fpn_masks, params, scales):
    """fpn_feats: tuple of (B, C_in, T_l) f32 (PyTorch NCT layout);
    fpn_masks: tuple of (B, T_l) bool.  Returns tuple of (B, 1, T_l) f32."""
    assert len(fpn_feats) == len(fpn_masks) == scales.shape[0]
    L = len(fpn_feats)
    B, Cin, _ = fpn_feats[0].shape
    K, _, F = params["w1"].shape
    pad = K // 2
    Tmax = max(int(f.shape[2]) for f in fpn_feats)
    Tp = Tmax + 2 * pad
    W = B * Tp

    # Pack every level into a common (Cin, W) slab.  Zero guard columns around
    # each batch segment reproduce the conv zero-padding and stop cross-batch
    # leakage through the lane-shifted taps.
    xs, ms = [], []
    for l in range(L):
        T_l = int(fpn_feats[l].shape[2])
        fp = jnp.pad(fpn_feats[l], ((0, 0), (0, 0), (pad, pad + Tmax - T_l)))
        xs.append(jnp.transpose(fp, (1, 0, 2)).reshape(Cin, W))
        m = jnp.pad(fpn_masks[l].astype(jnp.float32),
                    ((0, 0), (pad, pad + Tmax - T_l))).reshape(W)
        ms.append(jnp.stack([m, m * scales[l]], axis=0))
    x_all = jnp.stack(xs, axis=0).astype(jnp.bfloat16)       # (L, Cin, W)
    m_all = jnp.stack(ms, axis=0)                            # (L, 2, W)

    # Fuse the K taps into the weights: column j = k*Cin + c.
    w1c = jnp.transpose(params["w1"], (2, 0, 1)).reshape(F, K * Cin)
    w2c = jnp.transpose(params["w2"], (2, 0, 1)).reshape(F, K * F)
    w3c = params["w3"].reshape(K * F, 1)                     # f32 (VPU path)
    b1 = params["b1"].reshape(F, 1)
    b2 = params["b2"].reshape(F, 1)
    b3 = params["b3"].reshape(1, 1)

    out = pl.pallas_call(
        _reg_head_kernel,
        out_shape=jax.ShapeDtypeStruct((L, 1, W), jnp.float32),
        grid=(L,),
        in_specs=[
            pl.BlockSpec((1, Cin, W), lambda l: (l, 0, 0)),
            pl.BlockSpec((1, 2, W), lambda l: (l, 0, 0)),
            pl.BlockSpec((F, K * Cin), lambda l: (0, 0)),
            pl.BlockSpec((F, 1), lambda l: (0, 0)),
            pl.BlockSpec((F, K * F), lambda l: (0, 0)),
            pl.BlockSpec((F, 1), lambda l: (0, 0)),
            pl.BlockSpec((K * F, 1), lambda l: (0, 0)),
            pl.BlockSpec((1, 1), lambda l: (0, 0)),
        ],
        out_specs=pl.BlockSpec((1, 1, W), lambda l: (l, 0, 0)),
        compiler_params=pltpu.CompilerParams(
            dimension_semantics=("parallel",)),
    )(x_all, m_all, w1c.astype(jnp.bfloat16), b1,
      w2c.astype(jnp.bfloat16), b2, w3c, b3)

    # Unpack per level back to (B, 1, T_l).
    outs = tuple()
    for l in range(L):
        T_l = int(fpn_feats[l].shape[2])
        o = out[l, 0].reshape(B, Tp)[:, pad:pad + T_l]
        outs += (o[:, None, :],)
    return outs


# ------------------------- pure-JAX f32 reference ---------------------------
def _conv1d_ref(x, w, b):
    # x: (B, Cin, T), w: (K, Cin, Cout), b: (Cout,)
    K = w.shape[0]
    pad = K // 2
    T = x.shape[2]
    xp = jnp.pad(x, ((0, 0), (0, 0), (pad, pad)))
    out = 0.0
    for k in range(K):
        out = out + jnp.einsum("bct,cf->bft", xp[:, :, k:k + T], w[k],
                               precision=jax.lax.Precision.HIGHEST)
    return out + b[None, :, None]


def reg_head_ref(fpn_feats, fpn_masks, params, scales):
    outs = tuple()
    for l, (x, mask) in enumerate(zip(fpn_feats, fpn_masks)):
        m = mask.astype(jnp.float32)[:, None, :]             # (B, 1, T)
        h = jnp.maximum(_conv1d_ref(x, params["w1"], params["b1"]) * m, 0.0)
        h = jnp.maximum(_conv1d_ref(h, params["w2"], params["b2"]) * m, 0.0)
        o = _conv1d_ref(h, params["w3"], params["b3"]) * m
        outs += (jnp.maximum(scales[l] * o, 0.0),)
    return outs


# ----------------------------------- main ------------------------------------
if __name__ == "__main__":
    # Module hyper-parameters (small, consistent with __init__ defaults).
    input_dim = 32
    feat_dim = 32
    fpn_levels = 2
    kernel_size = 3
    B = 2
    T_levels = [16, 8]          # FPN pyramid: time halves per level

    key = jax.random.PRNGKey(0)
    ks = jax.random.split(key, 8)

    # Deterministic synthetic parameters (with_ln=False -> all convs biased).
    params = {
        "w1": 0.1 * jax.random.normal(ks[0], (kernel_size, input_dim, feat_dim), jnp.float32),
        "b1": 0.1 * jax.random.normal(ks[1], (feat_dim,), jnp.float32),
        "w2": 0.1 * jax.random.normal(ks[2], (kernel_size, feat_dim, feat_dim), jnp.float32),
        "b2": 0.1 * jax.random.normal(ks[3], (feat_dim,), jnp.float32),
        "w3": 0.1 * jax.random.normal(ks[4], (kernel_size, feat_dim, 1), jnp.float32),
        "b3": 0.1 * jax.random.normal(ks[5], (1,), jnp.float32),
    }
    # Scale() modules: init_value=1.0 per level (deterministic).
    scales = jnp.ones((fpn_levels,), jnp.float32)

    # FPN inputs: (B, C_in, T_l) per level (PyTorch NCT) + boolean masks (B, T_l).
    fpn_feats, fpn_masks = [], []
    valid_lens = [[13, 9], [6, 8]]
    for l, T in enumerate(T_levels):
        feat = jax.random.normal(ks[6 + l], (B, input_dim, T), jnp.float32)
        mask = jnp.arange(T)[None, :] < jnp.asarray(valid_lens[l])[:, None]
        fpn_feats.append(feat)
        fpn_masks.append(mask)

    # Run the single fused Pallas kernel.
    out = pt_transformer_reg_head(tuple(fpn_feats), tuple(fpn_masks), params, scales)
    out = jax.block_until_ready(out)

    # Validate against the pure-JAX f32 reference.  The kernel uses bf16 MXU
    # operands with f32 accumulation (perf guidance), hence the tolerance.
    ref = reg_head_ref(tuple(fpn_feats), tuple(fpn_masks), params, scales)
    for l in range(fpn_levels):
        assert out[l].shape == (B, 1, T_levels[l])
        assert jnp.allclose(out[l], ref[l], atol=2e-2, rtol=2e-2), f"level {l} mismatch"

    print("KERNEL_OK")
</pallas_src>

<mosaic_0001>
module attributes {stable_mosaic.version = 11 : i64} {
  func.func @_reg_head_kernel(%arg0: i32, %arg1: memref<1x32x36xbf16, #tpu.memory_space<vmem>>, %arg2: memref<1x2x36xf32, #tpu.memory_space<vmem>>, %arg3: memref<32x96xbf16, #tpu.memory_space<vmem>>, %arg4: memref<32x1xf32, #tpu.memory_space<vmem>>, %arg5: memref<32x96xbf16, #tpu.memory_space<vmem>>, %arg6: memref<32x1xf32, #tpu.memory_space<vmem>>, %arg7: memref<96x1xf32, #tpu.memory_space<vmem>>, %arg8: memref<1x1xf32, #tpu.memory_space<vmem>>, %arg9: memref<1x1x36xf32, #tpu.memory_space<vmem>>) attributes {dimension_semantics = [#tpu.dimension_semantics<parallel>], iteration_bounds = array<i64: 2>, scalar_prefetch = 0 : i64, scratch_operands = 0 : i64, tpu.core_type = #tpu.core_type<tc>, window_params = [{transform_indices = @transform_0, window_bounds = array<i64: 1, 32, 36>}, {transform_indices = @transform_1, window_bounds = array<i64: 1, 2, 36>}, {pipeline_mode = #tpu.pipeline_mode<synchronous>, transform_indices = @transform_2, window_bounds = array<i64: 32, 96>}, {pipeline_mode = #tpu.pipeline_mode<synchronous>, transform_indices = @transform_3, window_bounds = array<i64: 32, 1>}, {pipeline_mode = #tpu.pipeline_mode<synchronous>, transform_indices = @transform_4, window_bounds = array<i64: 32, 96>}, {pipeline_mode = #tpu.pipeline_mode<synchronous>, transform_indices = @transform_5, window_bounds = array<i64: 32, 1>}, {pipeline_mode = #tpu.pipeline_mode<synchronous>, transform_indices = @transform_6, window_bounds = array<i64: 96, 1>}, {pipeline_mode = #tpu.pipeline_mode<synchronous>, transform_indices = @transform_7, window_bounds = array<i64: 1, 1>}, {transform_indices = @transform_8, window_bounds = array<i64: 1, 1, 36>}]} {
    %c0 = arith.constant 0 : index
    %c0_0 = arith.constant 0 : index
    %c0_1 = arith.constant 0 : index
    %0 = vector.load %arg1[%c0, %c0_0, %c0_1] : memref<1x32x36xbf16, #tpu.memory_space<vmem>>, vector<1x32x36xbf16>
    %1 = vector.shape_cast %0 : vector<1x32x36xbf16> to vector<32x36xbf16>
    %c0_2 = arith.constant 0 : index
    %c0_3 = arith.constant 0 : index
    %c0_4 = arith.constant 0 : index
    %2 = vector.load %arg2[%c0_2, %c0_3, %c0_4] : memref<1x2x36xf32, #tpu.memory_space<vmem>>, vector<1x2x36xf32>
    %3 = vector.shape_cast %2 : vector<1x2x36xf32> to vector<2x36xf32>
    %4 = vector.extract_strided_slice %3 {offsets = [0, 0], sizes = [1, 36], strides = [1, 1]} : vector<2x36xf32> to vector<1x36xf32>
    %5 = vector.extract_strided_slice %3 {offsets = [1, 0], sizes = [1, 36], strides = [1, 1]} : vector<2x36xf32> to vector<1x36xf32>
    %c0_5 = arith.constant 0 : index
    %c0_6 = arith.constant 0 : index
    %6 = vector.load %arg3[%c0_5, %c0_6] : memref<32x96xbf16, #tpu.memory_space<vmem>>, vector<32x96xbf16>
    %cst = arith.constant 0.000000e+00 : bf16
    %7 = vector.broadcast %cst : bf16 to vector<32x1xbf16>
    %8 = tpu.concatenate %7, %1, %7 in 1 : vector<32x1xbf16>, vector<32x36xbf16>, vector<32x1xbf16> -> vector<32x38xbf16>
    %9 = vector.extract_strided_slice %8 {offsets = [0, 0], sizes = [32, 36], strides = [1, 1]} : vector<32x38xbf16> to vector<32x36xbf16>
    %10 = vector.extract_strided_slice %8 {offsets = [0, 1], sizes = [32, 36], strides = [1, 1]} : vector<32x38xbf16> to vector<32x36xbf16>
    %11 = vector.extract_strided_slice %8 {offsets = [0, 2], sizes = [32, 36], strides = [1, 1]} : vector<32x38xbf16> to vector<32x36xbf16>
    %12 = tpu.concatenate %9, %10, %11 in 0 : vector<32x36xbf16>, vector<32x36xbf16>, vector<32x36xbf16> -> vector<96x36xbf16>
    %cst_7 = arith.constant dense<0.000000e+00> : vector<32x36xf32>
    %13 = tpu.matmul %6, %12, %cst_7 {dimension_numbers = #tpu.dot_dimension_numbers<[1], [0], [0], [1], [0, 0, 1, 1], [], []>} : vector<32x96xbf16>, vector<96x36xbf16>, vector<32x36xf32> -> vector<32x36xf32>
    %c0_8 = arith.constant 0 : index
    %c0_9 = arith.constant 0 : index
    %14 = vector.load %arg4[%c0_8, %c0_9] : memref<32x1xf32, #tpu.memory_space<vmem>>, vector<32x1xf32>
    %15 = vector.broadcast %14 : vector<32x1xf32> to vector<32x36xf32>
    %16 = arith.addf %13, %15 : vector<32x36xf32>
    %17 = vector.broadcast %4 : vector<1x36xf32> to vector<32x36xf32>
    %18 = arith.mulf %16, %17 : vector<32x36xf32>
    %cst_10 = arith.constant 0.000000e+00 : f32
    %19 = vector.broadcast %cst_10 : f32 to vector<32x36xf32>
    %20 = arith.maximumf %18, %19 : vector<32x36xf32>
    %c0_11 = arith.constant 0 : index
    %c0_12 = arith.constant 0 : index
    %21 = vector.load %arg5[%c0_11, %c0_12] : memref<32x96xbf16, #tpu.memory_space<vmem>>, vector<32x96xbf16>
    %22 = arith.truncf %20 : vector<32x36xf32> to vector<32x36xbf16>
    %cst_13 = arith.constant 0.000000e+00 : bf16
    %23 = vector.broadcast %cst_13 : bf16 to vector<32x1xbf16>
    %24 = tpu.concatenate %23, %22, %23 in 1 : vector<32x1xbf16>, vector<32x36xbf16>, vector<32x1xbf16> -> vector<32x38xbf16>
    %25 = vector.extract_strided_slice %24 {offsets = [0, 0], sizes = [32, 36], strides = [1, 1]} : vector<32x38xbf16> to vector<32x36xbf16>
    %26 = vector.extract_strided_slice %24 {offsets = [0, 1], sizes = [32, 36], strides = [1, 1]} : vector<32x38xbf16> to vector<32x36xbf16>
    %27 = vector.extract_strided_slice %24 {offsets = [0, 2], sizes = [32, 36], strides = [1, 1]} : vector<32x38xbf16> to vector<32x36xbf16>
    %28 = tpu.concatenate %25, %26, %27 in 0 : vector<32x36xbf16>, vector<32x36xbf16>, vector<32x36xbf16> -> vector<96x36xbf16>
    %cst_14 = arith.constant dense<0.000000e+00> : vector<32x36xf32>
    %29 = tpu.matmul %21, %28, %cst_14 {dimension_numbers = #tpu.dot_dimension_numbers<[1], [0], [0], [1], [0, 0, 1, 1], [], []>} : vector<32x96xbf16>, vector<96x36xbf16>, vector<32x36xf32> -> vector<32x36xf32>
    %c0_15 = arith.constant 0 : index
    %c0_16 = arith.constant 0 : index
    %30 = vector.load %arg6[%c0_15, %c0_16] : memref<32x1xf32, #tpu.memory_space<vmem>>, vector<32x1xf32>
    %31 = vector.broadcast %30 : vector<32x1xf32> to vector<32x36xf32>
    %32 = arith.addf %29, %31 : vector<32x36xf32>
    %33 = vector.broadcast %4 : vector<1x36xf32> to vector<32x36xf32>
    %34 = arith.mulf %32, %33 : vector<32x36xf32>
    %cst_17 = arith.constant 0.000000e+00 : f32
    %35 = vector.broadcast %cst_17 : f32 to vector<32x36xf32>
    %36 = arith.maximumf %34, %35 : vector<32x36xf32>
    %cst_18 = arith.constant 0.000000e+00 : f32
    %37 = vector.broadcast %cst_18 : f32 to vector<32x1xf32>
    %38 = tpu.concatenate %37, %36, %37 in 1 : vector<32x1xf32>, vector<32x36xf32>, vector<32x1xf32> -> vector<32x38xf32>
    %39 = vector.extract_strided_slice %38 {offsets = [0, 0], sizes = [32, 36], strides = [1, 1]} : vector<32x38xf32> to vector<32x36xf32>
    %40 = vector.extract_strided_slice %38 {offsets = [0, 1], sizes = [32, 36], strides = [1, 1]} : vector<32x38xf32> to vector<32x36xf32>
    %41 = vector.extract_strided_slice %38 {offsets = [0, 2], sizes = [32, 36], strides = [1, 1]} : vector<32x38xf32> to vector<32x36xf32>
    %42 = tpu.concatenate %39, %40, %41 in 0 : vector<32x36xf32>, vector<32x36xf32>, vector<32x36xf32> -> vector<96x36xf32>
    %c0_19 = arith.constant 0 : index
    %c0_20 = arith.constant 0 : index
    %43 = vector.load %arg7[%c0_19, %c0_20] : memref<96x1xf32, #tpu.memory_space<vmem>>, vector<96x1xf32>
    %44 = vector.broadcast %43 : vector<96x1xf32> to vector<96x36xf32>
    %45 = arith.mulf %42, %44 : vector<96x36xf32>
    %cst_21 = arith.constant dense<0.000000e+00> : vector<36xf32>
    %46 = vector.multi_reduction <add>, %45, %cst_21 [0] : vector<96x36xf32> to vector<36xf32>
    %47 = vector.shape_cast %46 : vector<36xf32> to vector<1x36xf32>
    %c0_22 = arith.constant 0 : index
    %c0_23 = arith.constant 0 : index
    %48 = vector.load %arg8[%c0_22, %c0_23] : memref<1x1xf32, #tpu.memory_space<vmem>>, vector<1x1xf32>
    %49 = vector.broadcast %48 : vector<1x1xf32> to vector<1x36xf32>
    %50 = arith.addf %47, %49 : vector<1x36xf32>
    %51 = arith.mulf %50, %5 : vector<1x36xf32>
    %cst_24 = arith.constant 0.000000e+00 : f32
    %52 = vector.broadcast %cst_24 : f32 to vector<1x36xf32>
    %53 = arith.maximumf %51, %52 : vector<1x36xf32>
    %c0_25 = arith.constant 0 : index
    %c0_26 = arith.constant 0 : index
    %c0_27 = arith.constant 0 : index
    %54 = vector.load %arg9[%c0_25, %c0_26, %c0_27] : memref<1x1x36xf32, #tpu.memory_space<vmem>>, vector<1x1x36xf32>
    %55 = vector.shape_cast %54 : vector<1x1x36xf32> to vector<1x36xf32>
    %56 = vector.shape_cast %53 : vector<1x36xf32> to vector<1x1x36xf32>
    tpu.vector_store %arg9[%c0_25, %c0_26, %c0_27], %56 {strides = array<i32>} : memref<1x1x36xf32, #tpu.memory_space<vmem>>, vector<1x1x36xf32>,
    return
  }
  func.func @transform_0(%arg0: i32) -> (i32, i32, i32) {
    %c0_i32 = arith.constant 0 : i32
    %c0_i32_0 = arith.constant 0 : i32
    %c0_i32_1 = arith.constant 0 : i32
    return %arg0, %c0_i32, %c0_i32_0 : i32, i32, i32
  }
  func.func @transform_1(%arg0: i32) -> (i32, i32, i32) {
    %c0_i32 = arith.constant 0 : i32
    %c0_i32_0 = arith.constant 0 : i32
    %c0_i32_1 = arith.constant 0 : i32
    return %arg0, %c0_i32, %c0_i32_0 : i32, i32, i32
  }
  func.func @transform_2(%arg0: i32) -> (i32, i32) {
    %c0_i32 = arith.constant 0 : i32
    %c0_i32_0 = arith.constant 0 : i32
    %c0_i32_1 = arith.constant 0 : i32
    return %c0_i32, %c0_i32_0 : i32, i32
  }
  func.func @transform_3(%arg0: i32) -> (i32, i32) {
    %c0_i32 = arith.constant 0 : i32
    %c0_i32_0 = arith.constant 0 : i32
    %c0_i32_1 = arith.constant 0 : i32
    return %c0_i32, %c0_i32_0 : i32, i32
  }
  func.func @transform_4(%arg0: i32) -> (i32, i32) {
    %c0_i32 = arith.constant 0 : i32
    %c0_i32_0 = arith.constant 0 : i32
    %c0_i32_1 = arith.constant 0 : i32
    return %c0_i32, %c0_i32_0 : i32, i32
  }
  func.func @transform_5(%arg0: i32) -> (i32, i32) {
    %c0_i32 = arith.constant 0 : i32
    %c0_i32_0 = arith.constant 0 : i32
    %c0_i32_1 = arith.constant 0 : i32
    return %c0_i32, %c0_i32_0 : i32, i32
  }
  func.func @transform_6(%arg0: i32) -> (i32, i32) {
    %c0_i32 = arith.constant 0 : i32
    %c0_i32_0 = arith.constant 0 : i32
    %c0_i32_1 = arith.constant 0 : i32
    return %c0_i32, %c0_i32_0 : i32, i32
  }
  func.func @transform_7(%arg0: i32) -> (i32, i32) {
    %c0_i32 = arith.constant 0 : i32
    %c0_i32_0 = arith.constant 0 : i32
    %c0_i32_1 = arith.constant 0 : i32
    return %c0_i32, %c0_i32_0 : i32, i32
  }
  func.func @transform_8(%arg0: i32) -> (i32, i32, i32) {
    %c0_i32 = arith.constant 0 : i32
    %c0_i32_0 = arith.constant 0 : i32
    %c0_i32_1 = arith.constant 0 : i32
    return %arg0, %c0_i32, %c0_i32_0 : i32, i32, i32
  }
}

</mosaic_0001>

<bundles_post_ra>
// kernel: tpu_custom_call.1
= control target key start
LH: loop header
LB: loop body
LE: loop exit
PB: predicated region body
PF: predicated region fallthrough
CT: control target
= control target key end

     0   :  { %s1366_s0 = inlined_call_operand.vmem [shape: bf16[2,32,36], index: 0, kind: input, shape index: {}]   ;;  %s1367_s1 = inlined_call_operand.vmem [shape: f32[2,2,36], index: 1, kind: input, shape index: {}]   ;;  %s1368_s2 = inlined_call_operand.vmem [shape: bf16[32,96], index: 2, kind: input, shape index: {}]   ;;  %s1369_s3 = inlined_call_operand.vmem [shape: f32[32,1], index: 3, kind: input, shape index: {}]   ;;  %s1370_s4 = inlined_call_operand.vmem [shape: bf16[32,96], index: 4, kind: input, shape index: {}]   ;;  %s1371_s5 = inlined_call_operand.vmem [shape: f32[32,1], index: 5, kind: input, shape index: {}]   ;;  %s1372_s6 = inlined_call_operand.vmem [shape: f32[96,1], index: 6, kind: input, shape index: {}]   ;;  %s1373_s7 = inlined_call_operand.<no memory space> [shape: f32[1,1], index: 7, kind: input, shape index: {}]   ;;  %s1374_s8 = inlined_call_operand.hbm [shape: f32[2,1,36], index: 8, kind: output, shape index: {}]  }
   0x1   :  { %v13_v0 = vstv %s1373_s7 }
   0x2   :  { %14 = vst [vmem:[#allocation2] sm:$0x1] %v13_v0 }
   0x3   :  { %15 = vsyncpa [#allocation4], 0 }
   0x4   :  { %17 = vsyncpa [#allocation4 + $0x1], 0  ;;  %s1106_s29 = smov 0   ;;  %s1108_s30 = smov 0  }
   0x5   :  { %s1110_s9 = smov 0   ;;  %s1112_s10 = smov 0  }
   0x6 LB: > { %s1127_s7 = sadd.s32 4294967295, %s1051_s10   ;;  %s865_s11 = sadd.s32 4294967294, %s1051_s10   ;;  %s1051_s10 = sphi %s1112_s10, %s1380_s10   ;;  %s1047_s9 = sphi %s1110_s9, %s1379_s9   ;;  %s1043_s30 = sphi %s1108_s30, %s1378_s30   ;;  %s1039_s29 = sphi %s1106_s29, %s1377_s29  }
   0x7   : > { %s1131_s12 = sadd.s32 1, %s1051_s10   ;;  %s208_s13 = sadd.s32 1, %s1047_s9 }
   0x8   : > { %s205_s14 = ssub.s32 %s1051_s10, %s1131_s12  ;;  %p218_p0 = scmp.ne.s32.totalorder %s1047_s9, %s1043_s30 }
   0x9   : > { %p206_p1 = scmp.eq.s32.totalorder %s205_s14, 0  ;;  %p219_p2 = scmp.eq.s32.totalorder %s1127_s7, 1 }
   0xa   : > { %p224_p3 = scmp.ne.s32.totalorder %s1043_s30, %s1039_s29  ;;  %p225_p4 = scmp.eq.s32.totalorder %s865_s11, 1 }
   0xb   : > { %s1142_s15 = scalar_select %p206_p1, %s1047_s9, %s208_s13  }
   0xc   : > { %p1144_p5 = por %p219_p2, %p218_p0  ;;  %p1148_p6 = por %p225_p4, %p224_p3 }
   0xd   : > { %p868_p7 = scmp.ge.s32.totalorder %s1051_s10, 1  ;;  %p276_p8 = scmp.lt.s32.totalorder %s1051_s10, 3 }
   0xf   : > { %p277_p9 = pnand %p868_p7, %p276_p8 }
  0x10   : > { %p313_p10 = scmp.lt.s32.totalorder (!%p277_p9), %s1127_s7, 1  ;;  %s1053_s23 = smov (!%p277_p9), 1   ;;  %vm346_vm0 = vcmask (!%p277_p9), 7168   ;;  %vm352_vm1 = vcmask (!%p277_p9), 302080   ;;  %v985_v6 = vld [vmem:[%s1368_s2] sm:$0xff] (!%p277_p9)   ;;  %vm405_vm2 = vcmask (!%p277_p9), 785408   ;;  %v461_v20 = vlaneseq (!%p277_p9) }
  0x11   : > { %280 = sbr.rel (%p277_p9) target bundleno = 1262 (0x4ee), region = 52  ;;  %s1054_s24 = smov (!%p277_p9), 126   ;;  %914 = vmatprep.mubr.msk.bf16.mxu0 (!%p277_p9), %vm405_vm2, %v985_v6  ;;  %v371_v10 = vld [vmem:[%s1369_s3] sm:$0xff] (!%p277_p9)  ;;  %v1056_v11 = vmov (!%p277_p9), 0   ;;  %v374_v12 = vld [vmem:[%s1369_s3 + $0x18] sm:$0xff] (!%p277_p9)  ;;  %v372_v13 = vld [vmem:[%s1369_s3 + $0x8] sm:$0xff] (!%p277_p9) }
  0x12   : > { %s1055_s25 = smov (!%p277_p9), 127   ;;  %981 = vset.pattern.permute.xlu0 (!%p277_p9), %v1056_v11  ;;  %982 = vset.pattern.permute.xlu1 (!%p277_p9), %v1056_v11  ;;  %v373_v14 = vld [vmem:[%s1369_s3 + $0x10] sm:$0xff] (!%p277_p9)  ;;  %v986_v19 = vld [vmem:[%s1368_s2 + $0x8] sm:$0xff] (!%p277_p9)   ;;  %v1195_v21 = vshrl.u32 (!%p277_p9), %v461_v20, 7  ;;  %v987_v53 = vld [vmem:[%s1370_s4] sm:$0xff] (!%p277_p9)   ;;  %vm740_vm3 = vcmask (!%p277_p9), 293888  }
  0x13   : > { %930 = vmatprep.mubr.msk.bf16.mxu1 (!%p277_p9), %vm405_vm2, %v987_v53  ;;  %v508_v54 = vld [vmem:[%s1371_s5 + $0x8] sm:$0xff] (!%p277_p9)  ;;  %v507_v55 = vld [vmem:[%s1371_s5] sm:$0xff] (!%p277_p9)  ;;  %v510_v56 = vld [vmem:[%s1371_s5 + $0x18] sm:$0xff] (!%p277_p9)  ;;  %vm783_vm4 = vcmask (!%p277_p9), 287745  }
  0x14   : > { %v463_v24 = vsub.s32 (!%p277_p9), 0, %v1195_v21  ;;  %v509_v57 = vld [vmem:[%s1371_s5 + $0x10] sm:$0xff] (!%p277_p9)  ;;  %v988_v62 = vld [vmem:[%s1370_s4 + $0x8] sm:$0xff] (!%p277_p9)  }
  0x15   : > { %v657_v20 = vld [vmem:[%s1372_s6 + $0x8] sm:$0xff] (!%p277_p9) }
  0x18   : > { %s1156_s18 = scalar_select %p313_p10, %s1127_s7, 1 }
  0x1a   : > { %s885_s19 = sshll.u32 %s1156_s18, 4  ;;  %s871_s28 = sshll.u32 %s1156_s18, 1 }
  0x1b   : > { %s317_s22 = scalar_lea.vmem %s1366_s0, %s885_s19  ;;  %s321_s14 = scalar_lea.vmem %s1367_s1, %s871_s28 }
  0x1c   : > { %v983_v1 = vld [vmem:[%s317_s22] sm:$0xff]   ;;  %v984_v2 = vld [vmem:[%s317_s22 + $0x8] sm:$0xff]  }
  0x1d   : > { %342 = vrot.lane.b32.xlu0 %v983_v1, %s1053_s23  ;;  %v1201_v25 = vld [vmem:[%s321_s14] sm:$0x3] }
  0x1e   : > { %v1206_v27 = vrot.slane %v1201_v25, %v463_v24 }
  0x21   : > { %344 = vrot.lane.b32.xlu0 %v984_v2, %s1053_s23 }
  0x8f   : > { %v343_v3 = vpop.permute.xlu0 %342 }
  0x90   : > { %v349_v4 = vsel %vm346_vm0, 0, %v343_v3 }
  0x91   : > { %v353_v5 = vsel %vm352_vm1, %v349_v4, 0  ;;  %934 = vmatprep.subr.msk.bf16.mxu0 %vm352_vm1, %v349_v4 }
  0x92   : > { %365 = vrot.lane.b32.xlu0 %v353_v5, %s1054_s24  ;;  %359 = vrot.lane.b32.xlu1 %v353_v5, %s1055_s25 }
  0x93   : > { %903 = vmatpush3.bf16.msra.mxu0 %v353_v5  ;;  %v345_v7 = vpop.permute.xlu0 %344 }
  0x94   : > { %v351_v8 = vsel %vm346_vm0, 0, %v345_v7 }
  0x95   : > { %v355_v9 = vsel %vm352_vm1, %v351_v8, 0  ;;  %935 = vmatprep.subr.msk.bf16.mxu0 %vm352_vm1, %v351_v8 }
  0x96   : > { %361 = vrot.lane.b32.xlu1 %v355_v9, %s1055_s25  ;;  %377 = vperm.xlu0 %981, %v371_v10  }
  0x97   : > { %905 = vmatpush3.bf16.msra.mxu0 %v355_v9 }
  0x9a   : > { %367 = vrot.lane.b32.xlu1 %v355_v9, %s1054_s24  ;;  %392 = vperm.xlu0 %981, %v374_v12  }
  0x9e   : > { %382 = vperm.xlu1 %982, %v372_v13  }
  0xa2   : > { %387 = vperm.xlu1 %982, %v373_v14  }
 0x104   : > { %v360_v15 = vpop.permute.xlu1 %359  ;;  %v366_v17 = vpop.permute.xlu0 %365 }
 0x105   : > { %906 = vmatprep.subr.bf16.mxu0 %v360_v15 }
 0x106   : > { %907 = vmatpush3.bf16.msra.mxu0 %v360_v15 }
 0x108   : > { %v362_v16 = vpop.permute.xlu1 %361 }
 0x109   : > { %908 = vmatprep.subr.bf16.mxu0 %v362_v16 }
 0x10a   : > { %909 = vmatpush3.bf16.msra.mxu0 %v362_v16 }
 0x10b   : > { %910 = vmatprep.subr.bf16.mxu0 %v366_v17 }
 0x10c   : > { %v368_v18 = vpop.permute.xlu1 %367 }
 0x10e   : > { %911 = vmatpush3.bf16.msra.mxu0 %v366_v17 }
 0x10f   : > { %912 = vmatprep.subr.bf16.mxu0 %v368_v18 }
 0x112   : > { %913 = vmatpush3.bf16.msra.mxu0 %v368_v18 }
 0x115   : > { %915 = vmatmul.mubr.msk.bf16.vlgmr.msra.gmra.mrb[0].mxu0 %vm405_vm2, %v986_v19  ;;  %v378_v23 = vpop.permute.xlu0 %377  ;;  %v656_v19 = vld [vmem:[%s1372_s6] sm:$0xff] }
 0x119   : > { %v393_v29 = vpop.permute.xlu0 %392 }
 0x11d   : > { %v383_v22 = vpop.permute.xlu1 %382 }
 0x121   : > { %v388_v26 = vpop.permute.xlu1 %387 }
 0x1e8   : > { %v916_v28 = vpop.f32.mrb[0].mxu0 }
 0x1e9   : > { %v455_v30 = vadd.f32 %v916_v28, %v388_v26  ;;  %v446_v31 = vpop.f32.mrb[1].mxu0  ;;  %v660_v26 = vld [vmem:[%s1372_s6 + $0x20] sm:$0xff]  ;;  %v662_v28 = vld [vmem:[%s1372_s6 + $0x30] sm:$0xff] }
 0x1ea   : > { %v447_v32 = vadd.f32 %v446_v31, %v378_v23  ;;  %v917_v33 = vpop.f32.mrb[2].mxu0  ;;  %v659_v23 = vld [vmem:[%s1372_s6 + $0x18] sm:$0xff]  ;;  %v665_v31 = vld [vmem:[%s1372_s6 + $0x48] sm:$0xff] }
 0x1eb   : > { %v467_v34 = vmul.f32 %v1206_v27, %v455_v30  ;;  %v458_v35 = vadd.f32 %v917_v33, %v393_v29  ;;  %v449_v36 = vpop.f32.mrb[3].mxu0  ;;  %v663_v29 = vld [vmem:[%s1372_s6 + $0x38] sm:$0xff]  ;;  %v664_v30 = vld [vmem:[%s1372_s6 + $0x40] sm:$0xff] }
 0x1ec   : > { %v465_v37 = vmul.f32 %v1206_v27, %v447_v32  ;;  %v450_v38 = vadd.f32 %v449_v36, %v383_v22  ;;  %v658_v22 = vld [vmem:[%s1372_s6 + $0x10] sm:$0xff]  ;;  %v667_v33 = vld [vmem:[%s1372_s6 + $0x58] sm:$0xff] }
 0x1ed   : > { %v468_v39 = vmul.f32 %v1206_v27, %v458_v35  ;;  %v471_v41 = vmax.f32 %v467_v34, 0.0  ;;  %v666_v32 = vld [vmem:[%s1372_s6 + $0x50] sm:$0xff] }
 0x1ee   : > { %v466_v40 = vmul.f32 %v1206_v27, %v450_v38  ;;  %v469_v43 = vmax.f32 %v465_v37, 0.0 }
 0x1ef   : > { %v472_v42 = vmax.f32 %v468_v39, 0.0 }
 0x1f0   : > { %v470_v44 = vmax.f32 %v466_v40, 0.0 }
 0x1f1   : > { %v478_v45 = vpack.c.bf16 %v472_v42, %v471_v41 }
 0x1f2   : > { %v477_v46 = vpack.c.bf16 %v470_v44, %v469_v43 }
 0x1f3   : > { %483 = vrot.lane.b32.xlu0 %v478_v45, %s1053_s23 }
 0x1f4   : > { %481 = vrot.lane.b32.xlu1 %v477_v46, %s1053_s23 }
 0x265   : > { %v484_v47 = vpop.permute.xlu0 %483 }
 0x266   : > { %v488_v48 = vsel %vm346_vm0, 0, %v484_v47  ;;  %v482_v49 = vpop.permute.xlu1 %481 }
 0x267   : > { %v491_v50 = vsel %vm352_vm1, %v488_v48, 0  ;;  %v486_v51 = vsel %vm346_vm0, 0, %v482_v49 }
 0x268   : > { %v489_v52 = vsel %vm352_vm1, %v486_v51, 0  ;;  %936 = vmatprep.subr.msk.bf16.mxu1 %vm352_vm1, %v486_v51  ;;  %497 = vrot.lane.b32.xlu0 %v491_v50, %s1055_s25 }
 0x269   : > { %495 = vrot.lane.b32.xlu1 %v489_v52, %s1055_s25  ;;  %919 = vmatpush3.bf16.msra.mxu1 %v489_v52 }
 0x26a   : > { %937 = vmatprep.subr.msk.bf16.mxu1 %vm352_vm1, %v488_v48 }
 0x26c   : > { %503 = vrot.lane.b32.xlu0 %v491_v50, %s1054_s24 }
 0x26d   : > { %501 = vrot.lane.b32.xlu1 %v489_v52, %s1054_s24  ;;  %921 = vmatpush3.bf16.msra.mxu1 %v491_v50 }
 0x270   : > { %518 = vperm.xlu0 %981, %v508_v54  }
 0x271   : > { %513 = vperm.xlu1 %982, %v507_v55  }
 0x274   : > { %528 = vperm.xlu0 %981, %v510_v56  }
 0x275   : > { %523 = vperm.xlu1 %982, %v509_v57  }
 0x2da   : > { %v498_v59 = vpop.permute.xlu0 %497 }
 0x2db   : > { %v496_v58 = vpop.permute.xlu1 %495 }
 0x2dc   : > { %922 = vmatprep.subr.bf16.mxu1 %v496_v58 }
 0x2dd   : > { %923 = vmatpush3.bf16.msra.mxu1 %v496_v58  ;;  %v770_v58 = vld [vmem:[#allocation2] sm:$0x1] }
 0x2de   : > { %924 = vmatprep.subr.bf16.mxu1 %v498_v59  ;;  %v504_v61 = vpop.permute.xlu0 %503 }
 0x2df   : > { %v502_v60 = vpop.permute.xlu1 %501 }
 0x2e1   : > { %925 = vmatpush3.bf16.msra.mxu1 %v498_v59 }
 0x2e2   : > { %926 = vmatprep.subr.bf16.mxu1 %v502_v60 }
 0x2e5   : > { %927 = vmatpush3.bf16.msra.mxu1 %v502_v60 }
 0x2e6   : > { %928 = vmatprep.subr.bf16.mxu1 %v504_v61 }
 0x2e9   : > { %929 = vmatpush3.bf16.msra.mxu1 %v504_v61 }
 0x2ec   : > { %931 = vmatmul.mubr.msk.bf16.vlgmr.msra.gmra.mrb[0].mxu1 %vm405_vm2, %v988_v62 }
 0x2ef   : > { %v519_v0 = vpop.permute.xlu0 %518 }
 0x2f0   : > { %v514_v63 = vpop.permute.xlu1 %513 }
 0x2f3   : > { %v529_v7 = vpop.permute.xlu0 %528 }
 0x2f4   : > { %v524_v2 = vpop.permute.xlu1 %523 }
 0x3bf   : > { %v932_v1 = vpop.f32.mrb[0].mxu1 }
 0x3c0   : > { %v581_v3 = vpop.f32.mrb[1].mxu1  ;;  %v590_v4 = vadd.f32 %v932_v1, %v524_v2 }
 0x3c1   : > { %v582_v5 = vadd.f32 %v581_v3, %v514_v63  ;;  %v933_v6 = vpop.f32.mrb[2].mxu1 }
 0x3c2   : > { %v584_v8 = vpop.f32.mrb[3].mxu1  ;;  %v593_v10 = vadd.f32 %v933_v6, %v529_v7  ;;  %v598_v12 = vmul.f32 %v590_v4, %v1206_v27 }
 0x3c3   : > { %v596_v9 = vmul.f32 %v582_v5, %v1206_v27  ;;  %v585_v11 = vadd.f32 %v584_v8, %v519_v0 }
 0x3c4   : > { %v599_v15 = vmul.f32 %v593_v10, %v1206_v27  ;;  %v602_v17 = vmax.f32 %v598_v12, 0.0 }
 0x3c5   : > { %v600_v13 = vmax.f32 %v596_v9, 0.0  ;;  %v597_v14 = vmul.f32 %v585_v11, %v1206_v27  ;;  %v661_v27 = vld [vmem:[%s1372_s6 + $0x28] sm:$0xff] }
 0x3c6   : > { %v603_v18 = vmax.f32 %v599_v15, 0.0 }
 0x3c7   : > { %v601_v16 = vmax.f32 %v597_v14, 0.0  ;;  %608 = vrot.lane.b32.xlu1 %v600_v13, %s1053_s23 }
 0x3c9   : > { %610 = vrot.lane.b32.xlu0 %v601_v16, %s1053_s23 }
 0x3cb   : > { %612 = vrot.lane.b32.xlu1 %v602_v17, %s1053_s23 }
 0x3cd   : > { %614 = vrot.lane.b32.xlu0 %v603_v18, %s1053_s23 }
 0x3cf   : > { %670 = vperm.xlu1 %982, %v656_v19  }
 0x3d1   : > { %675 = vperm.xlu0 %981, %v657_v20  }
 0x3d3   : > { %680 = vperm.xlu1 %982, %v658_v22  }
 0x3d5   : > { %685 = vperm.xlu0 %981, %v659_v23  }
 0x3d7   : > { %690 = vperm.xlu1 %982, %v660_v26  }
 0x3d9   : > { %695 = vperm.xlu0 %981, %v661_v27  }
 0x3db   : > { %700 = vperm.xlu1 %982, %v662_v28  }
 0x3dd   : > { %705 = vperm.xlu0 %981, %v663_v29  }
 0x3e1   : > { %710 = vperm.xlu0 %981, %v664_v30  }
 0x3e5   : > { %715 = vperm.xlu0 %981, %v665_v31  }
 0x3e9   : > { %720 = vperm.xlu0 %981, %v666_v32  }
 0x3ed   : > { %725 = vperm.xlu0 %981, %v667_v33  }
 0x439   : > { %v609_v34 = vpop.permute.xlu1 %608 }
 0x43a   : > { %v620_v42 = vsel %vm346_vm0, 0.0, %v609_v34 }
 0x43b   : > { %v611_v35 = vpop.permute.xlu0 %610  ;;  %v624_v45 = vsel %vm352_vm1, %v620_v42, 0.0 }
 0x43c   : > { %v621_v36 = vsel %vm346_vm0, 0.0, %v611_v35 }
 0x43d   : > { %v625_v37 = vsel %vm352_vm1, %v621_v36, 0.0  ;;  %v613_v38 = vpop.permute.xlu1 %612 }
 0x43e   : > { %v622_v39 = vsel %vm346_vm0, 0.0, %v613_v38  ;;  %646 = vrot.lane.b32.xlu0 %v625_v37, %s1054_s24 }
 0x43f   : > { %v626_v40 = vsel %vm352_vm1, %v622_v39, 0.0  ;;  %v615_v41 = vpop.permute.xlu0 %614 }
 0x440   : > { %v623_v43 = vsel %vm346_vm0, 0.0, %v615_v41  ;;  %636 = vrot.lane.b32.xlu1 %v626_v40, %s1055_s25 }
 0x441   : > { %v627_v44 = vsel %vm352_vm1, %v623_v43, 0.0 }
 0x442   : > { %650 = vrot.lane.b32.xlu0 %v627_v44, %s1054_s24 }
 0x444   : > { %632 = vrot.lane.b32.xlu1 %v624_v45, %s1055_s25 }
 0x448   : > { %634 = vrot.lane.b32.xlu1 %v625_v37, %s1055_s25 }
 0x44c   : > { %638 = vrot.lane.b32.xlu1 %v627_v44, %s1055_s25  ;;  %s882_s25 = sshll.u32 %s1127_s7, 4  ;;  %s1057_s7 = smov [#allocation3]  }
 0x44d   : > { %s1324_s26 = scalar_lea.hbm %s1374_s8, %s882_s25  ;;  %s993_s11 = sshll.u32 %s1057_s7, 4  ;;  %s994_s11 = int_to_ptr.vmem [resolvable:$false] %s993_s11 }
 0x44e   : > { %v671_v46 = vpop.permute.xlu1 %670  ;;  %s995_s13 = scalar_lea.vmem %s994_s11, 32 }
 0x44f   : > { %v728_v47 = vmul.f32 %v671_v46, %v624_v45 }
 0x450   : > { %v676_v48 = vpop.permute.xlu0 %675  ;;  %644 = vrot.lane.b32.xlu1 %v624_v45, %s1054_s24 }
 0x451   : > { %v729_v49 = vmul.f32 %v676_v48, %v625_v37  ;;  %v741_v51 = vsel %vm740_vm3, %v728_v47, 0.0 }
 0x452   : > { %v681_v50 = vpop.permute.xlu1 %680 }
 0x453   : > { %v742_v52 = vsel %vm740_vm3, %v729_v49, 0.0  ;;  %v730_v53 = vmul.f32 %v681_v50, %v626_v40 }
 0x454   : > { %v743_v54 = vadd.f32 %v742_v52, %v741_v51  ;;  %v686_v55 = vpop.permute.xlu0 %685  ;;  %648 = vrot.lane.b32.xlu1 %v626_v40, %s1054_s24  ;;  %s311_s24 = sand.u32 1, %s1043_s30  }
 0x455   : > { %v744_v56 = vsel %vm740_vm3, %v730_v53, 0.0  ;;  %v731_v57 = vmul.f32 %v686_v55, %v627_v44  ;;  %s312_s19 = scalar_lea.vmem [#allocation3], %s311_s24  ;;  %s786_s27 = scalar_lea.sflag [#allocation4], %s311_s24 }
 0x456   : > { %v745_v59 = vadd.f32 %v744_v56, %v743_v54  ;;  %v691_v0 = vpop.permute.xlu1 %690  ;;  %s798_s20 = sshll.u32 %s312_s19, 4  ;;  %s1326_s20 = int_to_ptr.vmem [resolvable:$true] %s798_s20 }
 0x457   : > { %v746_v60 = vsel %vm740_vm3, %v731_v57, 0.0  ;;  %s989_s28 = scalar_lea.vmem %s1326_s20, 16  ;;  %p996_p0 = scmp.lt.s32.totalorder %s1326_s20, %s994_s11 }
 0x458   : > { %v747_v61 = vadd.f32 %v746_v60, %v745_v59  ;;  %773 = vperm.xlu1 %982, %v770_v58   ;;  %v696_v62 = vpop.permute.xlu0 %695  ;;  %p990_p11 = scmp.ne.s32.totalorder %s1326_s20, %s989_s28  ;;  %p997_p1 = scmp.lt.s32.totalorder %s995_s13, %s989_s28 }
 0x45a   : > { %v701_v2 = vpop.permute.xlu1 %700  ;;  %p991_p12 = pnand %p990_p11, %p1144_p5  ;;  %p998_p2 = por %p997_p1, %p996_p0 }
 0x45c   : > { %v706_v63 = vpop.permute.xlu0 %705  ;;  %p992_p13 = pneg %p991_p12 }
 0x45e   : > { %p999_p3 = pnand %p998_p2, %p992_p13 }
 0x460   : > { %v711_v1 = vpop.permute.xlu0 %710 }
 0x464   : > { %v716_v3 = vpop.permute.xlu0 %715 }
 0x468   : > { %v721_v5 = vpop.permute.xlu0 %720 }
 0x46c   : > { %v726_v9 = vpop.permute.xlu0 %725 }
 0x4b0   : > { %v647_v15 = vpop.permute.xlu0 %646 }
 0x4b1   : > { %v737_v26 = vmul.f32 %v716_v3, %v647_v15 }
 0x4b2   : > { %v637_v4 = vpop.permute.xlu1 %636 }
 0x4b3   : > { %v734_v11 = vmul.f32 %v701_v2, %v637_v4  ;;  %v758_v33 = vsel %vm740_vm3, %v737_v26, 0.0 }
 0x4b4   : > { %v651_v28 = vpop.permute.xlu0 %650 }
 0x4b5   : > { %v752_v18 = vsel %vm740_vm3, %v734_v11, 0.0  ;;  %v739_v34 = vmul.f32 %v726_v9, %v651_v28 }
 0x4b6   : > { %v633_v6 = vpop.permute.xlu1 %632 }
 0x4b7   : > { %v732_v7 = vmul.f32 %v691_v0, %v633_v6  ;;  %v762_v39 = vsel %vm740_vm3, %v739_v34, 0.0 }
 0x4b9   : > { %v748_v8 = vsel %vm740_vm3, %v732_v7, 0.0 }
 0x4ba   : > { %v635_v10 = vpop.permute.xlu1 %634  ;;  %v749_v13 = vadd.f32 %v748_v8, %v747_v61 }
 0x4bb   : > { %v733_v12 = vmul.f32 %v696_v62, %v635_v10 }
 0x4bd   : > { %v750_v14 = vsel %vm740_vm3, %v733_v12, 0.0 }
 0x4be   : > { %v751_v16 = vadd.f32 %v750_v14, %v749_v13  ;;  %v639_v17 = vpop.permute.xlu1 %638 }
 0x4bf   : > { %v735_v19 = vmul.f32 %v706_v63, %v639_v17 }
 0x4c0   : > { %v753_v20 = vadd.f32 %v752_v18, %v751_v16 }
 0x4c1   : > { %v754_v22 = vsel %vm740_vm3, %v735_v19, 0.0 }
 0x4c2   : > { %v645_v23 = vpop.permute.xlu1 %644  ;;  %v755_v29 = vadd.f32 %v754_v22, %v753_v20 }
 0x4c3   : > { %v736_v27 = vmul.f32 %v711_v1, %v645_v23 }
 0x4c5   : > { %v756_v30 = vsel %vm740_vm3, %v736_v27, 0.0 }
 0x4c6   : > { %v757_v31 = vadd.f32 %v756_v30, %v755_v29  ;;  %v649_v32 = vpop.permute.xlu1 %648 }
 0x4c7   : > { %v738_v35 = vmul.f32 %v721_v5, %v649_v32 }
 0x4c8   : > { %v759_v36 = vadd.f32 %v758_v33, %v757_v31 }
 0x4c9   : > { %v760_v37 = vsel %vm740_vm3, %v738_v35, 0.0 }
 0x4ca   : > { %v761_v38 = vadd.f32 %v760_v37, %v759_v36 }
 0x4cc   : > { %v763_v40 = vadd.f32 %v762_v39, %v761_v38 }
 0x4ce   : > { %v764_v41 = vrot.slane %v763_v40, 4 }
 0x4d0   : > { %v765_v42 = vadd.f32 %v764_v41, %v763_v40 }
 0x4d2   : > { %v766_v43 = vrot.slane %v765_v42, 2 }
 0x4d4   : > { %v767_v44 = vadd.f32 %v766_v43, %v765_v42 }
 0x4d6   : > { %v768_v45 = vrot.slane %v767_v44, 1 }
 0x4d7   : > { %v774_v46 = vpop.permute.xlu1 %773 }
 0x4d8   : > { %v769_v47 = vadd.f32 %v768_v45, %v767_v44  ;;  %v779_v48 = vrot.slane %v774_v46, %v463_v24 }
 0x4da   : > { %v780_v49 = vadd.f32 %v779_v48, %v769_v47 }
 0x4dc   : > { %v781_v50 = vmul.f32 %v780_v49, %v1201_v25 }
 0x4de   : > { %v782_v51 = vmax.f32 %v781_v50, 0.0 }
 0x4e0   : > { %784 = vst.msk [vmem:[%s312_s19 - $0x1] sm:$0x2] %vm783_vm4, %v782_v51 }
 0x4e1   : > { %1002 = shalt.err (!%p999_p3)
}
 0x4e2   : > { %s1003_s14 = scalar_lea.hbm %s1324_s26, 16  ;;  %s1007_s24 = scalar_lea.hbm %s1374_s8, 32 }
 0x4e3   : > { %p1004_p4 = scmp.ne.s32.totalorder %s1324_s26, %s1003_s14  ;;  %p1008_p9 = scmp.lt.u32.totalorder %s1324_s26, %s1374_s8 }
 0x4e4   : > { %p1009_p10 = scmp.lt.u32.totalorder %s1007_s24, %s1003_s14  ;;  %p1011_p12 = scmp.lt.u32.totalorder %s1003_s14, %s1324_s26 }
 0x4e5   : > { %p1005_p7 = pnand %p1004_p4, %p1144_p5 }
 0x4e6   : > { %p1010_p11 = por %p1009_p10, %p1008_p9 }
 0x4e7   : > { %p1006_p8 = pneg %p1005_p7 }
 0x4e8   : > { %p1012_p13 = por %p1011_p12, %p1010_p11 }
 0x4ea   : > { %p1013_p0 = pnand %p1012_p13, %p1006_p8 }
 0x4ec   : > { %1016 = shalt.err (!%p1013_p0)
}
 0x4ed   : > { %938 = dma.vmem_to_hbm [thread:$0]  (%p1144_p5), %s1326_s20, 16, %s1324_s26, %s786_s27  }
 0x4ee PF: > { %p944_p1 = scmp.ge.s32.totalorder %s1051_s10, 2  ;;  %s810_s21 = sand.u32 1, %s1039_s29  }
 0x4ef   : > { %s811_s22 = scalar_lea.sflag [#allocation4], %s810_s21 }
 0x4f0   : > { %p941_p2 = pnand %p944_p1, %p1148_p6 }
 0x4f2   : > { %1034 = dma.done.wait (!%p941_p2), %s811_s22, 16  }
 0x4f3   : > { %1036 = vsyncadd (!%p941_p2), %s811_s22, 4294967280  ;;  %p20_p3 = scmp.ge.s32.totalorder %s1131_s12, 4   ;;  %s1377_s29 = smov %s1043_s30 }
 0x4f4   : > { %s1378_s30 = smov %s1047_s9  ;;  %s1379_s9 = smov %s1142_s15 }
 0x4f5   : > { %s1380_s10 = smov %s1131_s12  ;;  %22 = sbr.rel (!%p20_p3) target bundleno = 6 (0x6), region = 90 }
 0x4fc   :  { %815 = vsyncpa [#allocation4], 1 }
 0x4fd   :  { %817 = vsyncpa [#allocation4 + $0x1], 1 }

</bundles_post_ra>
